<compile_context>
chip_gen: v6e
topology: v6e:2x2x1
jax: 0.10.0
libtpu: 0.0.40
codegen_flags: <defaults>
</compile_context>

<pallas_src>
import functools

import jax
import jax.numpy as jnp
from jax import lax
from jax.experimental import pallas as pl
from jax.experimental.pallas import tpu as pltpu

# Module hyper-parameters (CartPole: 4 observations, 2 actions; C51 atoms)
N_OBS = 4
N_ACTIONS = 2
N_ATOMS = 51
HID_FEAT = 512
HID_HEAD = 256
ATOMS_PAD = 128          # each action's atoms live in their own 128-lane group


def _round_up(x, m):
    return (x + m - 1) // m * m


def ddqn_kernel(x_ref,
                w1_ref, b1_ref,
                wh1_ref, bh1_ref,
                wv2_ref, bv2_ref,
                wa2_ref, ba2_ref,
                out_ref,
                *, n_actions, n_atoms, atoms_pad, hid_head):
    """One batch tile: feature MLP -> fused dueling heads -> per-action softmax."""
    # feature_layer: Linear(n_obs, 512) + ReLU.  K=4 contraction; the MXU has
    # slack here, so keep it on the MXU (a VPU broadcast-MAC variant only pays
    # off if the MXU push slot ever becomes the binding slot).
    x = x_ref[...].astype(w1_ref.dtype)
    feat = jnp.maximum(
        jnp.dot(x, w1_ref[...], preferred_element_type=jnp.float32) + b1_ref[...], 0.0)

    # Fused head layer 1: [value_hidden | advantage_hidden] in one (512, 512)
    # matmul; split at lane 256 (2x128-lane aligned -> no XLU moves).
    h = jnp.maximum(
        jnp.dot(feat.astype(wh1_ref.dtype), wh1_ref[...],
                preferred_element_type=jnp.float32) + bh1_ref[...], 0.0)
    vh = h[:, :hid_head]
    ah = h[:, hid_head:]

    # Head layer 2 on lane-padded weights: value -> (TB, 128), adv -> (TB, A*128).
    # Padded columns are exactly zero (zero weights + zero bias).
    value = jnp.dot(vh.astype(wv2_ref.dtype), wv2_ref[...],
                    preferred_element_type=jnp.float32) + bv2_ref[...]
    adv = jnp.dot(ah.astype(wa2_ref.dtype), wa2_ref[...],
                  preferred_element_type=jnp.float32) + ba2_ref[...]

    # advantage.mean(dim=1, keepdim=True): average the 128-lane action groups
    # (all slices are 128-lane aligned -> free).
    adv_mean = adv[:, :atoms_pad]
    for a in range(1, n_actions):
        adv_mean = adv_mean + adv[:, a * atoms_pad:(a + 1) * atoms_pad]
    adv_mean = adv_mean * (1.0 / float(n_actions))

    center = value - adv_mean                                    # (TB, 128)

    # Mask of the 51 real atoms inside each 128-lane group (hoisted out of the loop).
    tb = center.shape[0]
    lane = lax.broadcasted_iota(jnp.int32, (tb, atoms_pad), 1)
    valid = lane < n_atoms

    slabs = []
    for a in range(n_actions):                                   # static unroll (A=2)
        q_a = center + adv[:, a * atoms_pad:(a + 1) * atoms_pad]
        q_m = jnp.where(valid, q_a, -1e30)                       # padded lanes -> -inf-ish
        m = jnp.max(q_m, axis=-1, keepdims=True)
        e = jnp.exp(q_m - m)                                     # padded lanes -> 0
        denom = jnp.sum(e, axis=-1, keepdims=True)
        slabs.append(e * pl.reciprocal(denom, approx=True))      # EUP reciprocal (free slot)
    # Single lane-dense (TB, A*128) store.
    out_ref[...] = jnp.concatenate(slabs, axis=-1)


def ddqn_forward(x, params, *, batch_tile=256):
    """x: (B, N_OBS) float32.  Returns (B, N_ACTIONS, N_ATOMS) float32."""
    B = x.shape[0]
    tb = min(batch_tile, _round_up(B, 8))
    padded_b = _round_up(B, tb)
    if padded_b != B:
        x = jnp.pad(x, ((0, padded_b - B), (0, 0)))
    grid = (padded_b // tb,)

    weights = (
        params["w1"], params["b1"],
        params["wh1"], params["bh1"],
        params["wv2"], params["bv2"],
        params["wa2"], params["ba2"],
    )

    def resident(shape):
        # Whole array, same block every grid step -> stays resident in VMEM.
        return pl.BlockSpec(shape, lambda i: (0,) * len(shape))

    out_pad = pl.pallas_call(
        functools.partial(ddqn_kernel, n_actions=N_ACTIONS, n_atoms=N_ATOMS,
                          atoms_pad=ATOMS_PAD, hid_head=HID_HEAD),
        out_shape=jax.ShapeDtypeStruct((padded_b, N_ACTIONS * ATOMS_PAD), jnp.float32),
        grid=grid,
        in_specs=[pl.BlockSpec((tb, N_OBS), lambda i: (i, 0))]
                 + [resident(w.shape) for w in weights],
        out_specs=pl.BlockSpec((tb, N_ACTIONS * ATOMS_PAD), lambda i: (i, 0)),
        compiler_params=pltpu.CompilerParams(dimension_semantics=("parallel",)),
    )(x, *weights)

    # glue: slice padded lanes/rows back to the torch output shape (B, A, 51).
    return out_pad.reshape(padded_b, N_ACTIONS, ATOMS_PAD)[:B, :, :N_ATOMS]


def init_params(key, *, mxu_dtype=jnp.bfloat16):
    """Mirror nn.Linear default init (U(-1/sqrt(fan_in), +)), torch (out, in) layout,
    transpose to (in, out), fuse the two head-1 layers, and lane-pad the head-2
    layers so each action's 51 atoms occupy their own 128-lane group."""
    def linear(key, fan_in, fan_out):
        kw, kb = jax.random.split(key)
        bound = 1.0 / jnp.sqrt(float(fan_in))
        w = jax.random.uniform(kw, (fan_out, fan_in), jnp.float32, -bound, bound)
        b = jax.random.uniform(kb, (fan_out,), jnp.float32, -bound, bound)
        return w.T, b.reshape(1, fan_out)

    keys = jax.random.split(key, 5)
    w1, b1 = linear(keys[0], N_OBS, HID_FEAT)
    wv1, bv1 = linear(keys[1], HID_FEAT, HID_HEAD)
    wv2, bv2 = linear(keys[2], HID_HEAD, N_ATOMS)
    wa1, ba1 = linear(keys[3], HID_FEAT, HID_HEAD)
    wa2, ba2 = linear(keys[4], HID_HEAD, N_ACTIONS * N_ATOMS)

    # Fuse head layer 1: one (512, 512) weight; kernel splits at lane 256.
    wh1 = jnp.concatenate([wv1, wa1], axis=1)
    bh1 = jnp.concatenate([bv1, ba1], axis=1)

    # Lane-pad head layer 2 to 128 lanes per action (zeros in the padded columns).
    wv2_p = jnp.zeros((HID_HEAD, ATOMS_PAD), jnp.float32).at[:, :N_ATOMS].set(wv2)
    bv2_p = jnp.zeros((1, ATOMS_PAD), jnp.float32).at[:, :N_ATOMS].set(bv2)
    wa2_p = jnp.zeros((HID_HEAD, N_ACTIONS * ATOMS_PAD), jnp.float32)
    ba2_p = jnp.zeros((1, N_ACTIONS * ATOMS_PAD), jnp.float32)
    for a in range(N_ACTIONS):
        wa2_p = wa2_p.at[:, a * ATOMS_PAD:a * ATOMS_PAD + N_ATOMS].set(
            wa2[:, a * N_ATOMS:(a + 1) * N_ATOMS])
        ba2_p = ba2_p.at[:, a * ATOMS_PAD:a * ATOMS_PAD + N_ATOMS].set(
            ba2[:, a * N_ATOMS:(a + 1) * N_ATOMS])

    # Weights in bf16 for the MXU (f32 accumulation in-kernel); biases stay f32.
    return dict(
        w1=w1.astype(mxu_dtype), b1=b1,
        wh1=wh1.astype(mxu_dtype), bh1=bh1,
        wv2=wv2_p.astype(mxu_dtype), bv2=bv2_p,
        wa2=wa2_p.astype(mxu_dtype), ba2=ba2_p,
    )


if __name__ == "__main__":
    key = jax.random.PRNGKey(0)
    pkey, xkey = jax.random.split(key)
    params = init_params(pkey)

    # Small shape consistent with the module (CartPole: 4 observations).
    batch = 2
    x = jax.random.normal(xkey, (batch, N_OBS), dtype=jnp.float32)
    q_dist = ddqn_forward(x, params)
    jax.block_until_ready(q_dist)

    # Sanity: softmax over atoms sums to 1 for every (batch, action).
    # (approx reciprocal perturbs normalization at ~1e-3 relative -> loosened tol.)
    assert q_dist.shape == (batch, N_ACTIONS, N_ATOMS)
    sums = jnp.sum(q_dist, axis=-1)
    assert bool(jnp.all(jnp.abs(sums - 1.0) < 5e-3))
    assert bool(jnp.all(q_dist >= 0.0))

    # Exercise the batch grid / padding path (2 grid steps, partial last tile).
    xb = jax.random.normal(xkey, (400, N_OBS), dtype=jnp.float32)
    q_big = ddqn_forward(xb, params, batch_tile=256)
    jax.block_until_ready(q_big)
    assert q_big.shape == (400, N_ACTIONS, N_ATOMS)
    assert bool(jnp.all(jnp.abs(jnp.sum(q_big, axis=-1) - 1.0) < 5e-3))

    print("KERNEL_OK")
</pallas_src>

<mosaic_0001>
module attributes {stable_mosaic.version = 11 : i64} {
  func.func @ddqn_kernel(%arg0: i32, %arg1: memref<8x4xf32, #tpu.memory_space<vmem>>, %arg2: memref<4x512xbf16, #tpu.memory_space<vmem>>, %arg3: memref<1x512xf32, #tpu.memory_space<vmem>>, %arg4: memref<512x512xbf16, #tpu.memory_space<vmem>>, %arg5: memref<1x512xf32, #tpu.memory_space<vmem>>, %arg6: memref<256x128xbf16, #tpu.memory_space<vmem>>, %arg7: memref<1x128xf32, #tpu.memory_space<vmem>>, %arg8: memref<256x256xbf16, #tpu.memory_space<vmem>>, %arg9: memref<1x256xf32, #tpu.memory_space<vmem>>, %arg10: memref<8x256xf32, #tpu.memory_space<vmem>>) attributes {dimension_semantics = [#tpu.dimension_semantics<parallel>], iteration_bounds = array<i64: 1>, scalar_prefetch = 0 : i64, scratch_operands = 0 : i64, tpu.core_type = #tpu.core_type<tc>, window_params = [{transform_indices = @transform_0, window_bounds = array<i64: 8, 4>}, {pipeline_mode = #tpu.pipeline_mode<synchronous>, transform_indices = @transform_1, window_bounds = array<i64: 4, 512>}, {pipeline_mode = #tpu.pipeline_mode<synchronous>, transform_indices = @transform_2, window_bounds = array<i64: 1, 512>}, {pipeline_mode = #tpu.pipeline_mode<synchronous>, transform_indices = @transform_3, window_bounds = array<i64: 512, 512>}, {pipeline_mode = #tpu.pipeline_mode<synchronous>, transform_indices = @transform_4, window_bounds = array<i64: 1, 512>}, {pipeline_mode = #tpu.pipeline_mode<synchronous>, transform_indices = @transform_5, window_bounds = array<i64: 256, 128>}, {pipeline_mode = #tpu.pipeline_mode<synchronous>, transform_indices = @transform_6, window_bounds = array<i64: 1, 128>}, {pipeline_mode = #tpu.pipeline_mode<synchronous>, transform_indices = @transform_7, window_bounds = array<i64: 256, 256>}, {pipeline_mode = #tpu.pipeline_mode<synchronous>, transform_indices = @transform_8, window_bounds = array<i64: 1, 256>}, {transform_indices = @transform_9, window_bounds = array<i64: 8, 256>}]} {
    %c0 = arith.constant 0 : index
    %c0_0 = arith.constant 0 : index
    %0 = vector.load %arg1[%c0, %c0_0] : memref<8x4xf32, #tpu.memory_space<vmem>>, vector<8x4xf32>
    %1 = arith.truncf %0 : vector<8x4xf32> to vector<8x4xbf16>
    %c0_1 = arith.constant 0 : index
    %c0_2 = arith.constant 0 : index
    %2 = vector.load %arg2[%c0_1, %c0_2] : memref<4x512xbf16, #tpu.memory_space<vmem>>, vector<4x512xbf16>
    %cst = arith.constant dense<0.000000e+00> : vector<8x512xf32>
    %3 = tpu.matmul %1, %2, %cst {dimension_numbers = #tpu.dot_dimension_numbers<[1], [0], [0], [1], [0, 0, 1, 1], [], []>} : vector<8x4xbf16>, vector<4x512xbf16>, vector<8x512xf32> -> vector<8x512xf32>
    %c0_3 = arith.constant 0 : index
    %c0_4 = arith.constant 0 : index
    %4 = vector.load %arg3[%c0_3, %c0_4] : memref<1x512xf32, #tpu.memory_space<vmem>>, vector<1x512xf32>
    %5 = vector.broadcast %4 : vector<1x512xf32> to vector<8x512xf32>
    %6 = arith.addf %3, %5 : vector<8x512xf32>
    %cst_5 = arith.constant 0.000000e+00 : f32
    %7 = vector.broadcast %cst_5 : f32 to vector<8x512xf32>
    %8 = arith.maximumf %6, %7 : vector<8x512xf32>
    %9 = arith.truncf %8 : vector<8x512xf32> to vector<8x512xbf16>
    %c0_6 = arith.constant 0 : index
    %c0_7 = arith.constant 0 : index
    %10 = vector.load %arg4[%c0_6, %c0_7] : memref<512x512xbf16, #tpu.memory_space<vmem>>, vector<512x512xbf16>
    %cst_8 = arith.constant dense<0.000000e+00> : vector<8x512xf32>
    %11 = tpu.matmul %9, %10, %cst_8 {dimension_numbers = #tpu.dot_dimension_numbers<[1], [0], [0], [1], [0, 0, 1, 1], [], []>} : vector<8x512xbf16>, vector<512x512xbf16>, vector<8x512xf32> -> vector<8x512xf32>
    %c0_9 = arith.constant 0 : index
    %c0_10 = arith.constant 0 : index
    %12 = vector.load %arg5[%c0_9, %c0_10] : memref<1x512xf32, #tpu.memory_space<vmem>>, vector<1x512xf32>
    %13 = vector.broadcast %12 : vector<1x512xf32> to vector<8x512xf32>
    %14 = arith.addf %11, %13 : vector<8x512xf32>
    %cst_11 = arith.constant 0.000000e+00 : f32
    %15 = vector.broadcast %cst_11 : f32 to vector<8x512xf32>
    %16 = arith.maximumf %14, %15 : vector<8x512xf32>
    %17 = vector.extract_strided_slice %16 {offsets = [0, 0], sizes = [8, 256], strides = [1, 1]} : vector<8x512xf32> to vector<8x256xf32>
    %18 = vector.extract_strided_slice %16 {offsets = [0, 256], sizes = [8, 256], strides = [1, 1]} : vector<8x512xf32> to vector<8x256xf32>
    %19 = arith.truncf %17 : vector<8x256xf32> to vector<8x256xbf16>
    %c0_12 = arith.constant 0 : index
    %c0_13 = arith.constant 0 : index
    %20 = vector.load %arg6[%c0_12, %c0_13] : memref<256x128xbf16, #tpu.memory_space<vmem>>, vector<256x128xbf16>
    %cst_14 = arith.constant dense<0.000000e+00> : vector<8x128xf32>
    %21 = tpu.matmul %19, %20, %cst_14 {dimension_numbers = #tpu.dot_dimension_numbers<[1], [0], [0], [1], [0, 0, 1, 1], [], []>} : vector<8x256xbf16>, vector<256x128xbf16>, vector<8x128xf32> -> vector<8x128xf32>
    %c0_15 = arith.constant 0 : index
    %c0_16 = arith.constant 0 : index
    %22 = vector.load %arg7[%c0_15, %c0_16] : memref<1x128xf32, #tpu.memory_space<vmem>>, vector<1x128xf32>
    %23 = vector.broadcast %22 : vector<1x128xf32> to vector<8x128xf32>
    %24 = arith.addf %21, %23 : vector<8x128xf32>
    %25 = arith.truncf %18 : vector<8x256xf32> to vector<8x256xbf16>
    %c0_17 = arith.constant 0 : index
    %c0_18 = arith.constant 0 : index
    %26 = vector.load %arg8[%c0_17, %c0_18] : memref<256x256xbf16, #tpu.memory_space<vmem>>, vector<256x256xbf16>
    %cst_19 = arith.constant dense<0.000000e+00> : vector<8x256xf32>
    %27 = tpu.matmul %25, %26, %cst_19 {dimension_numbers = #tpu.dot_dimension_numbers<[1], [0], [0], [1], [0, 0, 1, 1], [], []>} : vector<8x256xbf16>, vector<256x256xbf16>, vector<8x256xf32> -> vector<8x256xf32>
    %c0_20 = arith.constant 0 : index
    %c0_21 = arith.constant 0 : index
    %28 = vector.load %arg9[%c0_20, %c0_21] : memref<1x256xf32, #tpu.memory_space<vmem>>, vector<1x256xf32>
    %29 = vector.broadcast %28 : vector<1x256xf32> to vector<8x256xf32>
    %30 = arith.addf %27, %29 : vector<8x256xf32>
    %31 = vector.extract_strided_slice %30 {offsets = [0, 0], sizes = [8, 128], strides = [1, 1]} : vector<8x256xf32> to vector<8x128xf32>
    %32 = vector.extract_strided_slice %30 {offsets = [0, 128], sizes = [8, 128], strides = [1, 1]} : vector<8x256xf32> to vector<8x128xf32>
    %33 = arith.addf %31, %32 : vector<8x128xf32>
    %cst_22 = arith.constant 5.000000e-01 : f32
    %34 = vector.broadcast %cst_22 : f32 to vector<8x128xf32>
    %35 = arith.mulf %33, %34 : vector<8x128xf32>
    %36 = arith.subf %24, %35 : vector<8x128xf32>
    %37 = tpu.iota {dimensions = array<i32: 1>} : vector<8x128xi32>
    %c51_i32 = arith.constant 51 : i32
    %38 = vector.broadcast %c51_i32 : i32 to vector<8x128xi32>
    %39 = arith.cmpi slt, %37, %38 : vector<8x128xi32>
    %40 = vector.extract_strided_slice %30 {offsets = [0, 0], sizes = [8, 128], strides = [1, 1]} : vector<8x256xf32> to vector<8x128xf32>
    %41 = arith.addf %36, %40 : vector<8x128xf32>
    %cst_23 = arith.constant -1.000000e+30 : f32
    %42 = vector.broadcast %cst_23 : f32 to vector<8x128xf32>
    %43 = arith.select %39, %41, %42 : vector<8x128xi1>, vector<8x128xf32>
    %cst_24 = arith.constant dense<0xFF800000> : vector<8xf32>
    %44 = vector.multi_reduction <maximumf>, %43, %cst_24 [1] : vector<8x128xf32> to vector<8xf32>
    %45 = vector.shape_cast %44 : vector<8xf32> to vector<8x1xf32>
    %46 = vector.broadcast %45 : vector<8x1xf32> to vector<8x128xf32>
    %47 = arith.subf %43, %46 : vector<8x128xf32>
    %48 = math.exp %47 : vector<8x128xf32>
    %cst_25 = arith.constant dense<0.000000e+00> : vector<8xf32>
    %49 = vector.multi_reduction <add>, %48, %cst_25 [1] : vector<8x128xf32> to vector<8xf32>
    %50 = vector.shape_cast %49 : vector<8xf32> to vector<8x1xf32>
    %51 = tpu.reciprocal %50 {approx = true} : vector<8x1xf32> -> vector<8x1xf32>
    %52 = vector.broadcast %51 : vector<8x1xf32> to vector<8x128xf32>
    %53 = arith.mulf %48, %52 : vector<8x128xf32>
    %54 = vector.extract_strided_slice %30 {offsets = [0, 128], sizes = [8, 128], strides = [1, 1]} : vector<8x256xf32> to vector<8x128xf32>
    %55 = arith.addf %36, %54 : vector<8x128xf32>
    %cst_26 = arith.constant -1.000000e+30 : f32
    %56 = vector.broadcast %cst_26 : f32 to vector<8x128xf32>
    %57 = arith.select %39, %55, %56 : vector<8x128xi1>, vector<8x128xf32>
    %cst_27 = arith.constant dense<0xFF800000> : vector<8xf32>
    %58 = vector.multi_reduction <maximumf>, %57, %cst_27 [1] : vector<8x128xf32> to vector<8xf32>
    %59 = vector.shape_cast %58 : vector<8xf32> to vector<8x1xf32>
    %60 = vector.broadcast %59 : vector<8x1xf32> to vector<8x128xf32>
    %61 = arith.subf %57, %60 : vector<8x128xf32>
    %62 = math.exp %61 : vector<8x128xf32>
    %cst_28 = arith.constant dense<0.000000e+00> : vector<8xf32>
    %63 = vector.multi_reduction <add>, %62, %cst_28 [1] : vector<8x128xf32> to vector<8xf32>
    %64 = vector.shape_cast %63 : vector<8xf32> to vector<8x1xf32>
    %65 = tpu.reciprocal %64 {approx = true} : vector<8x1xf32> -> vector<8x1xf32>
    %66 = vector.broadcast %65 : vector<8x1xf32> to vector<8x128xf32>
    %67 = arith.mulf %62, %66 : vector<8x128xf32>
    %68 = tpu.concatenate %53, %67 in 1 : vector<8x128xf32>, vector<8x128xf32> -> vector<8x256xf32>
    %c0_29 = arith.constant 0 : index
    %c0_30 = arith.constant 0 : index
    %69 = vector.load %arg10[%c0_29, %c0_30] : memref<8x256xf32, #tpu.memory_space<vmem>>, vector<8x256xf32>
    tpu.vector_store %arg10[%c0_29, %c0_30], %68 {strides = array<i32>} : memref<8x256xf32, #tpu.memory_space<vmem>>, vector<8x256xf32>,
    return
  }
  func.func @transform_0(%arg0: i32) -> (i32, i32) {
    %c0_i32 = arith.constant 0 : i32
    %c0_i32_0 = arith.constant 0 : i32
    return %arg0, %c0_i32 : i32, i32
  }
  func.func @transform_1(%arg0: i32) -> (i32, i32) {
    %c0_i32 = arith.constant 0 : i32
    %c0_i32_0 = arith.constant 0 : i32
    %c0_i32_1 = arith.constant 0 : i32
    return %c0_i32, %c0_i32_0 : i32, i32
  }
  func.func @transform_2(%arg0: i32) -> (i32, i32) {
    %c0_i32 = arith.constant 0 : i32
    %c0_i32_0 = arith.constant 0 : i32
    %c0_i32_1 = arith.constant 0 : i32
    return %c0_i32, %c0_i32_0 : i32, i32
  }
  func.func @transform_3(%arg0: i32) -> (i32, i32) {
    %c0_i32 = arith.constant 0 : i32
    %c0_i32_0 = arith.constant 0 : i32
    %c0_i32_1 = arith.constant 0 : i32
    return %c0_i32, %c0_i32_0 : i32, i32
  }
  func.func @transform_4(%arg0: i32) -> (i32, i32) {
    %c0_i32 = arith.constant 0 : i32
    %c0_i32_0 = arith.constant 0 : i32
    %c0_i32_1 = arith.constant 0 : i32
    return %c0_i32, %c0_i32_0 : i32, i32
  }
  func.func @transform_5(%arg0: i32) -> (i32, i32) {
    %c0_i32 = arith.constant 0 : i32
    %c0_i32_0 = arith.constant 0 : i32
    %c0_i32_1 = arith.constant 0 : i32
    return %c0_i32, %c0_i32_0 : i32, i32
  }
  func.func @transform_6(%arg0: i32) -> (i32, i32) {
    %c0_i32 = arith.constant 0 : i32
    %c0_i32_0 = arith.constant 0 : i32
    %c0_i32_1 = arith.constant 0 : i32
    return %c0_i32, %c0_i32_0 : i32, i32
  }
  func.func @transform_7(%arg0: i32) -> (i32, i32) {
    %c0_i32 = arith.constant 0 : i32
    %c0_i32_0 = arith.constant 0 : i32
    %c0_i32_1 = arith.constant 0 : i32
    return %c0_i32, %c0_i32_0 : i32, i32
  }
  func.func @transform_8(%arg0: i32) -> (i32, i32) {
    %c0_i32 = arith.constant 0 : i32
    %c0_i32_0 = arith.constant 0 : i32
    %c0_i32_1 = arith.constant 0 : i32
    return %c0_i32, %c0_i32_0 : i32, i32
  }
  func.func @transform_9(%arg0: i32) -> (i32, i32) {
    %c0_i32 = arith.constant 0 : i32
    %c0_i32_0 = arith.constant 0 : i32
    return %arg0, %c0_i32 : i32, i32
  }
}

</mosaic_0001>

<bundles_post_ra>
// kernel: tpu_custom_call.1
= control target key start
LH: loop header
LB: loop body
LE: loop exit
PB: predicated region body
PF: predicated region fallthrough
CT: control target
= control target key end

     0   :  { %14 = vsyncpa [#allocation3], 0  ;;  %s2348_s0 = inlined_call_operand.vmem [shape: f32[8,4], index: 0, kind: input, shape index: {}]   ;;  %s2349_s1 = inlined_call_operand.vmem [shape: bf16[4,512], index: 1, kind: input, shape index: {}]   ;;  %s2350_s2 = inlined_call_operand.vmem [shape: f32[1,512], index: 2, kind: input, shape index: {}]   ;;  %s2351_s3 = inlined_call_operand.hbm [shape: bf16[512,512], index: 3, kind: input, shape index: {}]   ;;  %s2352_s4 = inlined_call_operand.vmem [shape: f32[1,512], index: 4, kind: input, shape index: {}]   ;;  %s2353_s5 = inlined_call_operand.hbm [shape: bf16[256,128], index: 5, kind: input, shape index: {}]   ;;  %s2354_s6 = inlined_call_operand.vmem [shape: f32[1,128], index: 6, kind: input, shape index: {}]   ;;  %s2355_s7 = inlined_call_operand.hbm [shape: bf16[256,256], index: 7, kind: input, shape index: {}]   ;;  %s2356_s8 = inlined_call_operand.vmem [shape: f32[1,256], index: 8, kind: input, shape index: {}]   ;;  %s2357_s9 = inlined_call_operand.hbm [shape: f32[8,256], index: 9, kind: output, shape index: {}]  }
   0x1   :  { %15 = vsyncpa [#allocation6], 0 }
   0x2   :  { %16 = vsyncpa [#allocation4], 0  ;;  %s2219_s30 = smov [#allocation5]  }
   0x3   :  { %s42_s10 = sshll.u32 %s2219_s30, 4  ;;  %s43_s10 = int_to_ptr.vmem [resolvable:$true] %s42_s10 }
   0x4   :  { %s2141_s11 = scalar_lea.vmem %s43_s10, 2048  ;;  %p2146_p1 = scmp.lt.s32.totalorder %s43_s10, %s43_s10 }
   0x5   :  { %p2142_p0 = scmp.ne.s32.totalorder %s43_s10, %s2141_s11  ;;  %p2147_p2 = scmp.lt.s32.totalorder %s2141_s11, %s2141_s11 }
   0x7   :  { %p2148_p3 = por %p2147_p2, %p2146_p1 }
   0x9   :  { %p2149_p4 = pnand %p2148_p3, %p2142_p0 }
   0xb   :  { %2152 = shalt.err (!%p2149_p4)
}
   0xc   :  { %s2220_s12 = smov 64   ;;  %s2221_s13 = smov 4  }
   0xd   :  { %48 = dma.hbm_to_vmem [thread:$0]  %s2353_s5, 2048, %s43_s10, [#allocation6], %s2220_s12, %s2220_s12, %s2221_s13  }
   0xe   :  { %s2222_s16 = smov [#allocation2]  }
   0xf   :  { %s28_s17 = sshll.u32 %s2222_s16, 4  ;;  %s29_s17 = int_to_ptr.vmem [resolvable:$true] %s28_s17 }
  0x10   :  { %s2161_s18 = scalar_lea.vmem %s29_s17, 16384  ;;  %p2166_p6 = scmp.lt.s32.totalorder %s29_s17, %s29_s17 }
  0x11   :  { %p2162_p5 = scmp.ne.s32.totalorder %s29_s17, %s2161_s18  ;;  %p2167_p7 = scmp.lt.s32.totalorder %s2161_s18, %s2161_s18 }
  0x13   :  { %p2168_p8 = por %p2167_p7, %p2166_p6 }
  0x15   :  { %p2169_p9 = pnand %p2168_p8, %p2162_p5 }
  0x17   :  { %2172 = shalt.err (!%p2169_p9)
}
  0x18   :  { %s2223_s19 = smov 256   ;;  %s2224_s20 = smov 16  }
  0x19   :  { %34 = dma.hbm_to_vmem [thread:$0]  %s2351_s3, 16384, %s29_s17, [#allocation3], %s2223_s19, %s2223_s19, %s2224_s20  }
  0x1a   :  { %s2225_s23 = smov [#allocation7]  }
  0x1b   :  { %s56_s24 = sshll.u32 %s2225_s23, 4  ;;  %s57_s24 = int_to_ptr.vmem [resolvable:$true] %s56_s24 }
  0x1c   :  { %s2181_s5 = scalar_lea.vmem %s57_s24, 4096  ;;  %p2186_p11 = scmp.lt.s32.totalorder %s57_s24, %s57_s24 }
  0x1d   :  { %p2182_p10 = scmp.ne.s32.totalorder %s57_s24, %s2181_s5  ;;  %p2187_p12 = scmp.lt.s32.totalorder %s2181_s5, %s2181_s5 }
  0x1f   :  { %p2188_p13 = por %p2187_p12, %p2186_p11 }
  0x21   :  { %p2189_p0 = pnand %p2188_p13, %p2182_p10 }
  0x23   :  { %2192 = shalt.err (!%p2189_p0)
}
  0x24   :  { %s2226_s25 = smov 128   ;;  %s2227_s26 = smov 8  }
  0x25   :  { %62 = dma.hbm_to_vmem [thread:$0]  %s2355_s7, 4096, %s57_s24, [#allocation6], %s2226_s25, %s2226_s25, %s2227_s26  }
  0x26   :  { %2213 = dma.done.wait [#allocation3], 16384  }
  0x27   :  { %2214 = vsyncadd [#allocation3], 4294950912 }
  0x28   :  { %2215 = dma.done.wait [#allocation6], 6144  }
  0x29   :  { %2216 = vsyncadd [#allocation6], 4294961152  ;;  %v80_v0 = vlaneseq  ;;  %v2228_v1 = vmov 1983009808   ;;  %v2229_v3 = vmov 0   ;;  %v77_v7 = vld [vmem:[%s2349_s1] sm:$0xff] }
  0x2a   :  { %v103_v2 = vunpack.c.l.s4 %v2228_v1  ;;  %167 = vmatprep.mubr.bf16.mxu0 %v2229_v3  ;;  %vm122_vm0 = vcmask 1041408   ;;  %v101_v8 = vcombine.high %v77_v7, %v77_v7  ;;  %v75_v10 = vld [vmem:[%s2348_s0] sm:$0xff]  ;;  %vm118_vm1 = vcmask 31744  }
  0x2b   :  { %v2291_v4 = vshrl.u32 %v80_v0, 7  ;;  %v76_v14 = vpack.c.bf16 %v75_v10, %v75_v10  ;;  %v1878_v16 = vld [vmem:[#allocation2 + $0x2e4] ss:$16 sps:$4 sm:$0xff]   ;;  %v1880_v17 = vld [vmem:[#allocation2 + $0x2e0] ss:$16 sps:$4 sm:$0xff]  }
  0x2c   :  { %v104_v5 = vunpack.c.0.s8 %v103_v2  ;;  %v1871_v19 = vld [vmem:[#allocation2 + $0xe4] ss:$16 sps:$4 sm:$0xff]   ;;  %1056 = vmatprep.subr.bf16.mxu1 %v1878_v16  ;;  %v1886_v21 = vld [vmem:[#allocation2 + $0x2c0] ss:$16 sps:$4 sm:$0xff]   ;;  %v1963_v16 = vld [vmem:[#allocation2 + $0xec] ss:$16 sps:$4 sm:$0xff]  }
  0x2d   :  { %1057 = vmatpush1.bf16.msra.mxu1 %v1880_v17  ;;  %v1884_v20 = vld [vmem:[#allocation2 + $0x2c4] ss:$16 sps:$4 sm:$0xff]   ;;  %v1892_v23 = vld [vmem:[#allocation2 + $0x2a0] ss:$16 sps:$4 sm:$0xff]  }
  0x2e   :  { %v107_v6 = vsub.s32 %v104_v5, %v2291_v4  ;;  %v1890_v22 = vld [vmem:[#allocation2 + $0x2a4] ss:$16 sps:$4 sm:$0xff]   ;;  %1058 = vmatprep.subr.bf16.mxu1 %v1884_v20  ;;  %v1869_v25 = vld [vmem:[#allocation2 + $0xe0] ss:$16 sps:$4 sm:$0xff]   ;;  %v1976_v20 = vld [vmem:[#allocation2 + $0x2ec] ss:$16 sps:$4 sm:$0xff]  }
  0x2f   :  { %v1896_v24 = vld [vmem:[#allocation2 + $0x284] ss:$16 sps:$4 sm:$0xff]   ;;  %v1898_v27 = vld [vmem:[#allocation2 + $0x280] ss:$16 sps:$4 sm:$0xff]  }
  0x30   :  { %v108_v9 = vrot.slane %v77_v7, %v107_v6  ;;  %v115_v11 = vrot.slane %v101_v8, %v107_v6  ;;  %v1874_v26 = vld [vmem:[#allocation2 + $0xc4] ss:$16 sps:$4 sm:$0xff]   ;;  %v1872_v29 = vld [vmem:[#allocation2 + $0xc0] ss:$16 sps:$4 sm:$0xff]  }
  0x31   :  { %1059 = vmatpush1.bf16.msra.mxu1 %v1886_v21  ;;  %v1902_v28 = vld [vmem:[#allocation2 + $0x264] ss:$16 sps:$4 sm:$0xff]   ;;  %v1904_v31 = vld [vmem:[#allocation2 + $0x260] ss:$16 sps:$4 sm:$0xff]   ;;  %v2303_v21 = vsub.s32 0, %v2291_v4 }
  0x32   :  { %v116_v12 = vcombine.high %v108_v9, %v108_v9  ;;  %v124_v13 = vsel %vm122_vm0, %v108_v9, 0  ;;  %v117_v15 = vcombine.high %v115_v11, %v115_v11  ;;  %v130_v18 = vsel %vm122_vm0, %v115_v11, 0  ;;  %1060 = vmatprep.subr.bf16.mxu1 %v1890_v22  ;;  %v1877_v30 = vld [vmem:[#allocation2 + $0xa4] ss:$16 sps:$4 sm:$0xff]   ;;  %v1875_v33 = vld [vmem:[#allocation2 + $0xa0] ss:$16 sps:$4 sm:$0xff]  }
  0x33   :  { %v1908_v32 = vld [vmem:[#allocation2 + $0x244] ss:$16 sps:$4 sm:$0xff]   ;;  %v1910_v35 = vld [vmem:[#allocation2 + $0x240] ss:$16 sps:$4 sm:$0xff]  }
  0x34   :  { %1653 = vmatprep.subr.msk.bf16.mxu0 %vm122_vm0, %v116_v12  ;;  %v1883_v34 = vld [vmem:[#allocation2 + $0x84] ss:$16 sps:$4 sm:$0xff]   ;;  %v1881_v37 = vld [vmem:[#allocation2 + $0x80] ss:$16 sps:$4 sm:$0xff]  }
  0x35   :  { %150 = vmatpush1.bf16.msra.mxu0 %v124_v13  ;;  %1061 = vmatpush1.bf16.msra.mxu1 %v1892_v23  ;;  %v1914_v36 = vld [vmem:[#allocation2 + $0x224] ss:$16 sps:$4 sm:$0xff]   ;;  %v1916_v39 = vld [vmem:[#allocation2 + $0x220] ss:$16 sps:$4 sm:$0xff]   ;;  %v2309_v23 = vsub.s32 1, %v2291_v4 }
  0x36   :  { %1655 = vmatprep.subr.msk.bf16.mxu0 %vm122_vm0, %v117_v15  ;;  %1062 = vmatprep.subr.bf16.mxu1 %v1896_v24  ;;  %v1889_v38 = vld [vmem:[#allocation2 + $0x64] ss:$16 sps:$4 sm:$0xff]   ;;  %v1887_v41 = vld [vmem:[#allocation2 + $0x60] ss:$16 sps:$4 sm:$0xff]  }
  0x37   :  { %v1920_v40 = vld [vmem:[#allocation2 + $0x204] ss:$16 sps:$4 sm:$0xff]   ;;  %v1922_v43 = vld [vmem:[#allocation2 + $0x200] ss:$16 sps:$4 sm:$0xff]  }
  0x38   :  { %1654 = vmatmul.mubr.msk.bf16.vlgmr.msra.gmra.mxu0 %vm118_vm1, %v76_v14  ;;  %v1895_v42 = vld [vmem:[#allocation2 + $0x44] ss:$16 sps:$4 sm:$0xff]   ;;  %v1893_v44 = vld [vmem:[#allocation2 + $0x40] ss:$16 sps:$4 sm:$0xff]  }
  0x39   :  { %191 = vmatpush1.bf16.msra.mxu0 %v130_v18  ;;  %208 = vmatprep.mubr.bf16.mxu0 %v2229_v3  ;;  %v1926_v45 = vld [vmem:[#allocation2 + $0x3e4] ss:$16 sps:$4 sm:$0xff]   ;;  %v1928_v47 = vld [vmem:[#allocation2 + $0x3e0] ss:$16 sps:$4 sm:$0xff]  }
  0x3a   :  { %1015 = vmatprep.subr.bf16.mxu0 %v1871_v19  ;;  %1063 = vmatpush1.bf16.msra.mxu1 %v1898_v27  ;;  %v1901_v46 = vld [vmem:[#allocation2 + $0x24] ss:$16 sps:$4 sm:$0xff]   ;;  %v1899_v49 = vld [vmem:[#allocation2 + $0x20] ss:$16 sps:$4 sm:$0xff]  }
  0x3b   :  { %1064 = vmatprep.subr.bf16.mxu1 %v1902_v28  ;;  %v1932_v48 = vld [vmem:[#allocation2 + $0x3c4] ss:$16 sps:$4 sm:$0xff]   ;;  %v1934_v51 = vld [vmem:[#allocation2 + $0x3c0] ss:$16 sps:$4 sm:$0xff]   ;;  %v90_v28 = vsub.s32 2, %v2291_v4 }
  0x3c   :  { %v1907_v50 = vld [vmem:[#allocation2 + $0x4] ss:$16 sps:$4 sm:$0xff]   ;;  %v1905_v53 = vld [vmem:[#allocation2] ss:$16 sps:$4 sm:$0xff]  }
  0x3d   :  { %v1938_v52 = vld [vmem:[#allocation2 + $0x3a4] ss:$16 sps:$4 sm:$0xff]   ;;  %v1940_v55 = vld [vmem:[#allocation2 + $0x3a0] ss:$16 sps:$4 sm:$0xff]  }
  0x3e   :  { %1065 = vmatpush1.bf16.msra.mxu1 %v1904_v31  ;;  %v1913_v54 = vld [vmem:[#allocation2 + $0x1e4] ss:$16 sps:$4 sm:$0xff]   ;;  %v1911_v57 = vld [vmem:[#allocation2 + $0x1e0] ss:$16 sps:$4 sm:$0xff]   ;;  %v94_v31 = vsub.s32 3, %v2291_v4 }
  0x3f   :  { %1066 = vmatprep.subr.bf16.mxu1 %v1908_v32  ;;  %v1944_v56 = vld [vmem:[#allocation2 + $0x384] ss:$16 sps:$4 sm:$0xff]   ;;  %v1946_v59 = vld [vmem:[#allocation2 + $0x380] ss:$16 sps:$4 sm:$0xff]  }
  0x40   :  { %1656 = vmatmul.mubr.msk.bf16.vlgmr.msra.gmra.mxu0 %vm118_vm1, %v76_v14  ;;  %v1919_v58 = vld [vmem:[#allocation2 + $0x1c4] ss:$16 sps:$4 sm:$0xff]   ;;  %v1917_v60 = vld [vmem:[#allocation2 + $0x1c0] ss:$16 sps:$4 sm:$0xff]  }
  0x41   :  { %1016 = vmatpush1.bf16.msra.mxu0 %v1869_v25  ;;  %v1925_v61 = vld [vmem:[#allocation2 + $0x1a4] ss:$16 sps:$4 sm:$0xff]   ;;  %v1923_v62 = vld [vmem:[#allocation2 + $0x1a0] ss:$16 sps:$4 sm:$0xff]  }
  0x42   :  { %1017 = vmatprep.subr.bf16.mxu0 %v1874_v26  ;;  %1067 = vmatpush1.bf16.msra.mxu1 %v1910_v35  ;;  %v1931_v63 = vld [vmem:[#allocation2 + $0x184] ss:$16 sps:$4 sm:$0xff]   ;;  %v1929_v1 = vld [vmem:[#allocation2 + $0x180] ss:$16 sps:$4 sm:$0xff]  }
  0x43   :  { %1068 = vmatprep.subr.bf16.mxu1 %v1914_v36  ;;  %v1937_v2 = vld [vmem:[#allocation2 + $0x164] ss:$16 sps:$4 sm:$0xff]   ;;  %v1935_v3 = vld [vmem:[#allocation2 + $0x160] ss:$16 sps:$4 sm:$0xff]  }
  0x44   :  { %v1943_v5 = vld [vmem:[#allocation2 + $0x144] ss:$16 sps:$4 sm:$0xff]   ;;  %v1941_v6 = vld [vmem:[#allocation2 + $0x140] ss:$16 sps:$4 sm:$0xff]  }
  0x45   :  { %1018 = vmatpush1.bf16.msra.mxu0 %v1872_v29  ;;  %v1949_v7 = vld [vmem:[#allocation2 + $0x124] ss:$16 sps:$4 sm:$0xff]   ;;  %v1947_v9 = vld [vmem:[#allocation2 + $0x120] ss:$16 sps:$4 sm:$0xff]  }
  0x46   :  { %1019 = vmatprep.subr.bf16.mxu0 %v1877_v30  ;;  %1069 = vmatpush1.bf16.msra.mxu1 %v1916_v39  ;;  %v1950_v8 = vld [vmem:[#allocation2 + $0x364] ss:$16 sps:$4 sm:$0xff]   ;;  %v1952_v10 = vld [vmem:[#allocation2 + $0x360] ss:$16 sps:$4 sm:$0xff]  }
  0x47   :  { %1070 = vmatprep.subr.bf16.mxu1 %v1920_v40  ;;  %v1955_v11 = vld [vmem:[#allocation2 + $0x104] ss:$16 sps:$4 sm:$0xff]   ;;  %v1953_v13 = vld [vmem:[#allocation2 + $0x100] ss:$16 sps:$4 sm:$0xff]  }
  0x48   :  { %v1956_v12 = vld [vmem:[#allocation2 + $0x344] ss:$16 sps:$4 sm:$0xff]   ;;  %v1958_v14 = vld [vmem:[#allocation2 + $0x340] ss:$16 sps:$4 sm:$0xff]  }
  0x49   :  { %1020 = vmatpush1.bf16.msra.mxu0 %v1875_v33  ;;  %v1959_v15 = vld [vmem:[#allocation2 + $0x324] ss:$16 sps:$4 sm:$0xff]   ;;  %v1964_v17 = vld [vmem:[#allocation2 + $0x320] ss:$16 sps:$4 sm:$0xff]  }
  0x4a   :  { %1021 = vmatprep.subr.bf16.mxu0 %v1883_v34  ;;  %1071 = vmatpush1.bf16.msra.mxu1 %v1922_v43  ;;  %v1965_v18 = vld [vmem:[#allocation2 + $0x304] ss:$16 sps:$4 sm:$0xff]   ;;  %v1970_v19 = vld [vmem:[#allocation2 + $0x300] ss:$16 sps:$4 sm:$0xff]  }
  0x4b   :  { %1072 = vmatprep.subr.bf16.mxu1 %v1926_v45  ;;  %v78_v22 = vld [vmem:[%s2350_s2] sm:$0xf] }
  0x4c   :  { %v83_v24 = vrot.slane %v78_v22, %v2303_v21  ;;  %v87_v25 = vrot.slane %v78_v22, %v2309_v23  ;;  %v91_v35 = vrot.slane %v78_v22, %v90_v28  ;;  %v95_v39 = vrot.slane %v78_v22, %v94_v31  ;;  %v2016_v22 = vld [vmem:[#allocation2 + $0x208] ss:$16 sps:$4 sm:$0xff]  }
  0x4d   :  { %1022 = vmatpush1.bf16.msra.mxu0 %v1881_v37 }
  0x4e   :  { %1023 = vmatprep.subr.bf16.mxu0 %v1889_v38  ;;  %1073 = vmatpush2.bf16.msra.mxu1 %v1928_v47  ;;  %v1961_v38 = vld [vmem:[#allocation2 + $0xe8] ss:$16 sps:$4 sm:$0xff]  }
  0x4f   :  { %1074 = vmatprep.subr.bf16.mxu1 %v1932_v48 }
  0x51   :  { %1024 = vmatpush1.bf16.msra.mxu0 %v1887_v41 }
  0x52   :  { %1025 = vmatprep.subr.bf16.mxu0 %v1895_v42  ;;  %1075 = vmatpush2.bf16.msra.mxu1 %v1934_v51  ;;  %v1969_v42 = vld [vmem:[#allocation2 + $0xcc] ss:$16 sps:$4 sm:$0xff]  }
  0x53   :  { %1076 = vmatprep.subr.bf16.mxu1 %v1938_v52 }
  0x55   :  { %1026 = vmatpush1.bf16.msra.mxu0 %v1893_v44 }
  0x56   :  { %1027 = vmatprep.subr.bf16.mxu0 %v1901_v46  ;;  %1077 = vmatpush2.bf16.msra.mxu1 %v1940_v55  ;;  %v1967_v46 = vld [vmem:[#allocation2 + $0xc8] ss:$16 sps:$4 sm:$0xff]  }
  0x57   :  { %1078 = vmatprep.subr.bf16.mxu1 %v1944_v56  ;;  %v1979_v56 = vld [vmem:[#allocation2 + $0x8c] ss:$16 sps:$4 sm:$0xff]  }
  0x59   :  { %1028 = vmatpush1.bf16.msra.mxu0 %v1899_v49  ;;  %v1973_v49 = vld [vmem:[#allocation2 + $0xac] ss:$16 sps:$4 sm:$0xff]  }
  0x5a   :  { %1029 = vmatprep.subr.bf16.mxu0 %v1907_v50  ;;  %1079 = vmatpush2.bf16.msra.mxu1 %v1946_v59  ;;  %v1980_v59 = vld [vmem:[#allocation2 + $0x2c8] ss:$16 sps:$4 sm:$0xff]  }
  0x5b   :  { %1080 = vmatprep.subr.bf16.mxu1 %v1950_v8  ;;  %v1995_v8 = vld [vmem:[#allocation2 + $0x28] ss:$16 sps:$4 sm:$0xff]  }
  0x5d   :  { %1030 = vmatpush1.bf16.msra.mxu0 %v1905_v53  ;;  %v1971_v53 = vld [vmem:[#allocation2 + $0xa8] ss:$16 sps:$4 sm:$0xff]  }
  0x5e   :  { %1031 = vmatprep.subr.bf16.mxu0 %v1913_v54  ;;  %1081 = vmatpush2.bf16.msra.mxu1 %v1952_v10  ;;  %v1974_v54 = vld [vmem:[#allocation2 + $0x2e8] ss:$16 sps:$4 sm:$0xff]   ;;  %v2003_v10 = vld [vmem:[#allocation2 + $0xc] ss:$16 sps:$4 sm:$0xff]  }
  0x5f   :  { %1082 = vmatprep.subr.bf16.mxu1 %v1956_v12  ;;  %v2001_v12 = vld [vmem:[#allocation2 + $0x8] ss:$16 sps:$4 sm:$0xff]  }
  0x61   :  { %1032 = vmatpush2.bf16.msra.mxu0 %v1911_v57  ;;  %v1982_v57 = vld [vmem:[#allocation2 + $0x2cc] ss:$16 sps:$4 sm:$0xff]  }
  0x62   :  { %1033 = vmatprep.subr.bf16.mxu0 %v1919_v58  ;;  %1083 = vmatpush2.bf16.msra.mxu1 %v1958_v14  ;;  %v1977_v58 = vld [vmem:[#allocation2 + $0x88] ss:$16 sps:$4 sm:$0xff]   ;;  %v2009_v14 = vld [vmem:[#allocation2 + $0x1ec] ss:$16 sps:$4 sm:$0xff]  }
  0x63   :  { %1084 = vmatprep.subr.bf16.mxu1 %v1959_v15  ;;  %v2012_v15 = vld [vmem:[#allocation2 + $0x22c] ss:$16 sps:$4 sm:$0xff]  }
  0x65   :  { %1034 = vmatpush2.bf16.msra.mxu0 %v1917_v60  ;;  %v1985_v60 = vld [vmem:[#allocation2 + $0x6c] ss:$16 sps:$4 sm:$0xff]  }
  0x66   :  { %1035 = vmatprep.subr.bf16.mxu0 %v1925_v61  ;;  %1085 = vmatpush2.bf16.msra.mxu1 %v1964_v17  ;;  %v1988_v61 = vld [vmem:[#allocation2 + $0x2ac] ss:$16 sps:$4 sm:$0xff]   ;;  %v2010_v17 = vld [vmem:[#allocation2 + $0x228] ss:$16 sps:$4 sm:$0xff]  }
  0x67   :  { %1086 = vmatprep.subr.bf16.mxu1 %v1965_v18  ;;  %v2015_v18 = vld [vmem:[#allocation2 + $0x1cc] ss:$16 sps:$4 sm:$0xff]  }
  0x69   :  { %1036 = vmatpush2.bf16.msra.mxu0 %v1923_v62  ;;  %v1983_v62 = vld [vmem:[#allocation2 + $0x68] ss:$16 sps:$4 sm:$0xff]  }
  0x6a   :  { %1037 = vmatprep.subr.bf16.mxu0 %v1931_v63  ;;  %1087 = vmatpush2.bf16.msra.mxu1 %v1970_v19  ;;  %v1986_v63 = vld [vmem:[#allocation2 + $0x2a8] ss:$16 sps:$4 sm:$0xff]   ;;  %v2018_v19 = vld [vmem:[#allocation2 + $0x20c] ss:$16 sps:$4 sm:$0xff]  }
  0x6b   :  { %1138 = vmatprep.subr.bf16.mxu1 %v1976_v20  ;;  %v2013_v20 = vld [vmem:[#allocation2 + $0x1c8] ss:$16 sps:$4 sm:$0xff]  }
  0x6d   :  { %1038 = vmatpush2.bf16.msra.mxu0 %v1929_v1  ;;  %v1991_v1 = vld [vmem:[#allocation2 + $0x4c] ss:$16 sps:$4 sm:$0xff]  }
  0x6e   :  { %1039 = vmatprep.subr.bf16.mxu0 %v1937_v2  ;;  %v1994_v2 = vld [vmem:[#allocation2 + $0x28c] ss:$16 sps:$4 sm:$0xff]  }
  0x71   :  { %1040 = vmatpush2.bf16.msra.mxu0 %v1935_v3  ;;  %v1989_v3 = vld [vmem:[#allocation2 + $0x48] ss:$16 sps:$4 sm:$0xff]  }
  0x72   :  { %1041 = vmatprep.subr.bf16.mxu0 %v1943_v5  ;;  %v1992_v5 = vld [vmem:[#allocation2 + $0x288] ss:$16 sps:$4 sm:$0xff]  }
  0x75   :  { %1042 = vmatpush2.bf16.msra.mxu0 %v1941_v6  ;;  %v1997_v6 = vld [vmem:[#allocation2 + $0x2c] ss:$16 sps:$4 sm:$0xff]  }
  0x76   :  { %1043 = vmatprep.subr.bf16.mxu0 %v1949_v7  ;;  %v2000_v7 = vld [vmem:[#allocation2 + $0x26c] ss:$16 sps:$4 sm:$0xff]  }
  0x79   :  { %1044 = vmatpush2.bf16.msra.mxu0 %v1947_v9  ;;  %v1998_v9 = vld [vmem:[#allocation2 + $0x268] ss:$16 sps:$4 sm:$0xff]  }
  0x7a   :  { %1045 = vmatprep.subr.bf16.mxu0 %v1955_v11  ;;  %v2006_v11 = vld [vmem:[#allocation2 + $0x24c] ss:$16 sps:$4 sm:$0xff]  }
  0x7d   :  { %1046 = vmatpush2.bf16.msra.mxu0 %v1953_v13  ;;  %v2004_v13 = vld [vmem:[#allocation2 + $0x248] ss:$16 sps:$4 sm:$0xff]  }
  0x7e   :  { %1097 = vmatprep.subr.bf16.mxu0 %v1963_v16  ;;  %v2007_v16 = vld [vmem:[#allocation2 + $0x1e8] ss:$16 sps:$4 sm:$0xff]  }
  0xf8   :  { %v169_v26 = vpop.f32.mrf.mxu0 }
  0xf9   :  { %v170_v27 = vadd.f32 %v169_v26, %v83_v24  ;;  %v2021_v24 = vld [vmem:[#allocation2 + $0x1ac] ss:$16 sps:$4 sm:$0xff]   ;;  %v2019_v26 = vld [vmem:[#allocation2 + $0x1a8] ss:$16 sps:$4 sm:$0xff]  }
  0xfa   :  { %v171_v29 = vpop.f32.mrf.mxu0 }
  0xfb   :  { %v172_v30 = vadd.f32 %v171_v29, %v87_v25  ;;  %v217_v32 = vmax.f32 %v170_v27, 0.0  ;;  %v2024_v25 = vld [vmem:[#allocation2 + $0x3ec] ss:$16 sps:$4 sm:$0xff]   ;;  %v2022_v27 = vld [vmem:[#allocation2 + $0x3e8] ss:$16 sps:$4 sm:$0xff]  }
  0xfc   :  { %v173_v33 = vpop.f32.mrf.mxu0  ;;  %v2027_v29 = vld [vmem:[#allocation2 + $0x18c] ss:$16 sps:$4 sm:$0xff]  }
  0xfd   :  { %v218_v34 = vmax.f32 %v172_v30, 0.0  ;;  %v2319_v40 = vpack.c.bf16 %v217_v32, %v217_v32  ;;  %v2030_v30 = vld [vmem:[#allocation2 + $0x3cc] ss:$16 sps:$4 sm:$0xff]   ;;  %v2025_v32 = vld [vmem:[#allocation2 + $0x188] ss:$16 sps:$4 sm:$0xff]  }
  0xfe   :  { %v174_v36 = vpop.f32.mrf.mxu0  ;;  %v2028_v33 = vld [vmem:[#allocation2 + $0x3c8] ss:$16 sps:$4 sm:$0xff]  }
  0xff   :  { %v222_v37 = vpack.c.bf16 %v218_v34, %v218_v34  ;;  %v2033_v34 = vld [vmem:[#allocation2 + $0x16c] ss:$16 sps:$4 sm:$0xff]   ;;  %v2031_v36 = vld [vmem:[#allocation2 + $0x168] ss:$16 sps:$4 sm:$0xff]  }
 0x100   :  { %v210_v41 = vpop.f32.mrf.mxu0 }
 0x101   :  { %v211_v43 = vadd.f32 %v210_v41, %v91_v35  ;;  %1047 = vmatprep.mubr.bf16.mxu0 %v222_v37  ;;  %v2036_v35 = vld [vmem:[#allocation2 + $0x3ac] ss:$16 sps:$4 sm:$0xff]   ;;  %v2037_v41 = vld [vmem:[#allocation2 + $0x148] ss:$16 sps:$4 sm:$0xff]  }
 0x102   :  { %v212_v44 = vpop.f32.mrf.mxu0  ;;  %1048 = vmatmul.mubr.bf16.vlgmr.msra.gmra.mxu0 %v2319_v40 }
 0x103   :  { %v213_v45 = vadd.f32 %v212_v44, %v95_v39  ;;  %1098 = vmatpush1.bf16.msra.mxu0 %v1961_v38  ;;  %1129 = vmatprep.mubr.bf16.mxu0 %v222_v37  ;;  %v219_v47 = vmax.f32 %v211_v43, 0.0  ;;  %v2034_v37 = vld [vmem:[#allocation2 + $0x3a8] ss:$16 sps:$4 sm:$0xff]   ;;  %v2039_v38 = vld [vmem:[#allocation2 + $0x14c] ss:$16 sps:$4 sm:$0xff]  }
 0x104   :  { %v214_v48 = vpop.f32.mrf.mxu0  ;;  %1099 = vmatprep.subr.bf16.mxu0 %v1969_v42  ;;  %v2042_v39 = vld [vmem:[#allocation2 + $0x38c] ss:$16 sps:$4 sm:$0xff]   ;;  %v2040_v42 = vld [vmem:[#allocation2 + $0x388] ss:$16 sps:$4 sm:$0xff]  }
 0x105   :  { %v220_v50 = vmax.f32 %v213_v45, 0.0  ;;  %v2322_v55 = vpack.c.bf16 %v219_v47, %v219_v47  ;;  %v2045_v43 = vld [vmem:[#allocation2 + $0x12c] ss:$16 sps:$4 sm:$0xff]   ;;  %v2043_v45 = vld [vmem:[#allocation2 + $0x128] ss:$16 sps:$4 sm:$0xff]  }
 0x106   :  { %v215_v51 = vpop.f32.mrf.mxu0  ;;  %v2048_v44 = vld [vmem:[#allocation2 + $0x36c] ss:$16 sps:$4 sm:$0xff]  }
 0x107   :  { %1100 = vmatpush1.bf16.msra.mxu0 %v1967_v46  ;;  %v224_v52 = vpack.c.bf16 %v220_v50, %v220_v50  ;;  %v2046_v46 = vld [vmem:[#allocation2 + $0x368] ss:$16 sps:$4 sm:$0xff]   ;;  %v2051_v47 = vld [vmem:[#allocation2 + $0x10c] ss:$16 sps:$4 sm:$0xff]  }
 0x108   :  { %1101 = vmatprep.subr.bf16.mxu0 %v1973_v49  ;;  %v2054_v48 = vld [vmem:[#allocation2 + $0x34c] ss:$16 sps:$4 sm:$0xff]   ;;  %v2049_v49 = vld [vmem:[#allocation2 + $0x108] ss:$16 sps:$4 sm:$0xff]  }
 0x109   :  { %1088 = vmatprep.mubr.bf16.mxu1 %v224_v52  ;;  %v2052_v50 = vld [vmem:[#allocation2 + $0x348] ss:$16 sps:$4 sm:$0xff]   ;;  %v2057_v51 = vld [vmem:[#allocation2 + $0x32c] ss:$16 sps:$4 sm:$0xff]  }
 0x10a   :  { %1089 = vmatmul.mubr.bf16.vlgmr.msra.gmra.mxu1 %v2322_v55 }
 0x10b   :  { %1102 = vmatpush1.bf16.msra.mxu0 %v1971_v53  ;;  %1139 = vmatpush1.bf16.msra.mxu1 %v1974_v54  ;;  %v2055_v53 = vld [vmem:[#allocation2 + $0x328] ss:$16 sps:$4 sm:$0xff]  }
 0x10c   :  { %1170 = vmatprep.mubr.bf16.mxu1 %v224_v52  ;;  %1103 = vmatprep.subr.bf16.mxu0 %v1979_v56  ;;  %v2061_v52 = vld [vmem:[#allocation5 + $0x78] sm:$0xff]  }
 0x10d   :  { %1140 = vmatprep.subr.bf16.mxu1 %v1982_v57  ;;  %v2062_v54 = vld [vmem:[#allocation5 + $0x38] sm:$0xff]   ;;  %v2063_v57 = vld [vmem:[#allocation5 + $0x70] sm:$0xff]  }
 0x10e   :  { %v2060_v56 = vld [vmem:[#allocation2 + $0x30c] ss:$16 sps:$4 sm:$0xff]  }
 0x10f   :  { %1104 = vmatpush1.bf16.msra.mxu0 %v1977_v58  ;;  %1141 = vmatpush1.bf16.msra.mxu1 %v1980_v59  ;;  %v2058_v58 = vld [vmem:[#allocation2 + $0x308] ss:$16 sps:$4 sm:$0xff]   ;;  %v2064_v59 = vld [vmem:[#allocation5 + $0x30] sm:$0xff]  }
 0x110   :  { %1105 = vmatprep.subr.bf16.mxu0 %v1985_v60  ;;  %1142 = vmatprep.subr.bf16.mxu1 %v1988_v61  ;;  %v2065_v60 = vld [vmem:[#allocation5 + $0x68] sm:$0xff]  }
 0x111   :  { %v2066_v61 = vld [vmem:[#allocation5 + $0x28] sm:$0xff]  }
 0x113   :  { %1106 = vmatpush1.bf16.msra.mxu0 %v1983_v62  ;;  %1143 = vmatpush1.bf16.msra.mxu1 %v1986_v63  ;;  %v2067_v62 = vld [vmem:[#allocation5 + $0x60] sm:$0xff]  }
 0x114   :  { %1107 = vmatprep.subr.bf16.mxu0 %v1991_v1  ;;  %1144 = vmatprep.subr.bf16.mxu1 %v1994_v2  ;;  %v2068_v63 = vld [vmem:[#allocation5 + $0x20] sm:$0xff]   ;;  %v2069_v1 = vld [vmem:[#allocation5 + $0x58] sm:$0xff]   ;;  %v2071_v2 = vld [vmem:[#allocation5 + $0x50] sm:$0xff]  }
 0x117   :  { %1108 = vmatpush1.bf16.msra.mxu0 %v1989_v3  ;;  %1145 = vmatpush1.bf16.msra.mxu1 %v1992_v5  ;;  %v2079_v3 = vld [vmem:[#allocation7 + $0x74] ss:$8 sps:$4 sm:$0xff]  }
 0x118   :  { %1109 = vmatprep.subr.bf16.mxu0 %v1997_v6  ;;  %1146 = vmatprep.subr.bf16.mxu1 %v2000_v7  ;;  %v2072_v5 = vld [vmem:[#allocation5 + $0x10] sm:$0xff]   ;;  %v2073_v7 = vld [vmem:[#allocation5 + $0x48] sm:$0xff]  }
 0x119   :  { %v2077_v6 = vld [vmem:[#allocation7 + $0x70] ss:$8 sps:$4 sm:$0xff]  }
 0x11b   :  { %1110 = vmatpush1.bf16.msra.mxu0 %v1995_v8  ;;  %1147 = vmatpush1.bf16.msra.mxu1 %v1998_v9  ;;  %v2082_v8 = vld [vmem:[#allocation7 + $0x64] ss:$8 sps:$4 sm:$0xff]   ;;  %v2080_v9 = vld [vmem:[#allocation7 + $0x60] ss:$8 sps:$4 sm:$0xff]  }
 0x11c   :  { %1111 = vmatprep.subr.bf16.mxu0 %v2003_v10  ;;  %1148 = vmatprep.subr.bf16.mxu1 %v2006_v11  ;;  %v2074_v10 = vld [vmem:[#allocation5 + $0x8] sm:$0xff]   ;;  %v2075_v11 = vld [vmem:[#allocation5 + $0x40] sm:$0xff]  }
 0x11f   :  { %1112 = vmatpush1.bf16.msra.mxu0 %v2001_v12  ;;  %1149 = vmatpush1.bf16.msra.mxu1 %v2004_v13  ;;  %v2083_v12 = vld [vmem:[#allocation7 + $0x50] ss:$8 sps:$4 sm:$0xff]   ;;  %v2088_v13 = vld [vmem:[#allocation7 + $0x44] ss:$8 sps:$4 sm:$0xff]  }
 0x120   :  { %1113 = vmatprep.subr.bf16.mxu0 %v2009_v14  ;;  %1150 = vmatprep.subr.bf16.mxu1 %v2012_v15  ;;  %v2076_v14 = vld [vmem:[#allocation5] sm:$0xff]  }
 0x121   :  { %v2086_v15 = vld [vmem:[#allocation7 + $0x40] ss:$8 sps:$4 sm:$0xff]  }
 0x123   :  { %1114 = vmatpush2.bf16.msra.mxu0 %v2007_v16  ;;  %1151 = vmatpush1.bf16.msra.mxu1 %v2010_v17  ;;  %v2091_v16 = vld [vmem:[#allocation7 + $0x34] ss:$8 sps:$4 sm:$0xff]   ;;  %v2089_v17 = vld [vmem:[#allocation7 + $0x30] ss:$8 sps:$4 sm:$0xff]  }
 0x124   :  { %1115 = vmatprep.subr.bf16.mxu0 %v2015_v18  ;;  %1152 = vmatprep.subr.bf16.mxu1 %v2018_v19  ;;  %v2094_v18 = vld [vmem:[#allocation7 + $0x24] ss:$8 sps:$4 sm:$0xff]   ;;  %v2092_v19 = vld [vmem:[#allocation7 + $0x20] ss:$8 sps:$4 sm:$0xff]  }
 0x127   :  { %1116 = vmatpush2.bf16.msra.mxu0 %v2013_v20  ;;  %1153 = vmatpush1.bf16.msra.mxu1 %v2016_v22  ;;  %v2097_v20 = vld [vmem:[#allocation7 + $0x14] ss:$8 sps:$4 sm:$0xff]   ;;  %v2095_v22 = vld [vmem:[#allocation7 + $0x10] ss:$8 sps:$4 sm:$0xff]  }
 0x128   :  { %1117 = vmatprep.subr.bf16.mxu0 %v2021_v24  ;;  %1154 = vmatprep.subr.bf16.mxu1 %v2024_v25  ;;  %v2100_v24 = vld [vmem:[#allocation7 + $0x4] ss:$8 sps:$4 sm:$0xff]   ;;  %v2098_v25 = vld [vmem:[#allocation7] ss:$8 sps:$4 sm:$0xff]  }
 0x12b   :  { %1118 = vmatpush2.bf16.msra.mxu0 %v2019_v26  ;;  %1155 = vmatpush2.bf16.msra.mxu1 %v2022_v27  ;;  %v2103_v26 = vld [vmem:[#allocation7 + $0xf4] ss:$8 sps:$4 sm:$0xff]   ;;  %v2101_v27 = vld [vmem:[#allocation7 + $0xf0] ss:$8 sps:$4 sm:$0xff]  }
 0x12c   :  { %1119 = vmatprep.subr.bf16.mxu0 %v2027_v29  ;;  %1156 = vmatprep.subr.bf16.mxu1 %v2030_v30  ;;  %v2106_v29 = vld [vmem:[#allocation7 + $0xe4] ss:$8 sps:$4 sm:$0xff]   ;;  %v2104_v30 = vld [vmem:[#allocation7 + $0xe0] ss:$8 sps:$4 sm:$0xff]  }
 0x12f   :  { %1120 = vmatpush2.bf16.msra.mxu0 %v2025_v32  ;;  %1157 = vmatpush2.bf16.msra.mxu1 %v2028_v33  ;;  %v2109_v32 = vld [vmem:[#allocation7 + $0xd4] ss:$8 sps:$4 sm:$0xff]   ;;  %v2107_v33 = vld [vmem:[#allocation7 + $0xd0] ss:$8 sps:$4 sm:$0xff]  }
 0x130   :  { %1121 = vmatprep.subr.bf16.mxu0 %v2033_v34  ;;  %1158 = vmatprep.subr.bf16.mxu1 %v2036_v35  ;;  %v2112_v34 = vld [vmem:[#allocation7 + $0xc4] ss:$8 sps:$4 sm:$0xff]   ;;  %v2110_v35 = vld [vmem:[#allocation7 + $0xc0] ss:$8 sps:$4 sm:$0xff]  }
 0x133   :  { %1122 = vmatpush2.bf16.msra.mxu0 %v2031_v36  ;;  %1159 = vmatpush2.bf16.msra.mxu1 %v2034_v37  ;;  %v2115_v36 = vld [vmem:[#allocation7 + $0xb4] ss:$8 sps:$4 sm:$0xff]   ;;  %v2113_v37 = vld [vmem:[#allocation7 + $0xb0] ss:$8 sps:$4 sm:$0xff]  }
 0x134   :  { %1123 = vmatprep.subr.bf16.mxu0 %v2039_v38  ;;  %1160 = vmatprep.subr.bf16.mxu1 %v2042_v39  ;;  %v2118_v38 = vld [vmem:[#allocation7 + $0xa4] ss:$8 sps:$4 sm:$0xff]   ;;  %v2116_v39 = vld [vmem:[#allocation7 + $0xa0] ss:$8 sps:$4 sm:$0xff]  }
 0x137   :  { %1124 = vmatpush2.bf16.msra.mxu0 %v2037_v41  ;;  %1161 = vmatpush2.bf16.msra.mxu1 %v2040_v42  ;;  %v2121_v41 = vld [vmem:[#allocation7 + $0x94] ss:$8 sps:$4 sm:$0xff]   ;;  %v2119_v42 = vld [vmem:[#allocation7 + $0x90] ss:$8 sps:$4 sm:$0xff]  }
 0x138   :  { %1125 = vmatprep.subr.bf16.mxu0 %v2045_v43  ;;  %1162 = vmatprep.subr.bf16.mxu1 %v2048_v44  ;;  %v2124_v43 = vld [vmem:[#allocation7 + $0x84] ss:$8 sps:$4 sm:$0xff]   ;;  %v2122_v44 = vld [vmem:[#allocation7 + $0x80] ss:$8 sps:$4 sm:$0xff]  }
 0x13b   :  { %1126 = vmatpush2.bf16.msra.mxu0 %v2043_v45  ;;  %1163 = vmatpush2.bf16.msra.mxu1 %v2046_v46  ;;  %v353_v45 = vld [vmem:[%s2352_s4] sm:$0xf] }
 0x13c   :  { %1127 = vmatprep.subr.bf16.mxu0 %v2051_v47  ;;  %1164 = vmatprep.subr.bf16.mxu1 %v2054_v48  ;;  %v358_v48 = vrot.slane %v353_v45, %v2303_v21 }
 0x13f   :  { %1128 = vmatpush2.bf16.msra.mxu0 %v2049_v49  ;;  %1165 = vmatpush2.bf16.msra.mxu1 %v2052_v50  ;;  %v362_v50 = vrot.slane %v353_v45, %v2309_v23 }
 0x140   :  { %1166 = vmatprep.subr.bf16.mxu1 %v2057_v51  ;;  %1834 = vmatprep.subr.bf16.mxu0 %v2061_v52 }
 0x142   :  { %1130 = vmatmul.mubr.bf16.vlgmr.msra.gmra.mxu0 %v2319_v40  ;;  %v2070_v40 = vld [vmem:[#allocation5 + $0x18] sm:$0xff]  }
 0x143   :  { %1167 = vmatpush2.bf16.msra.mxu1 %v2055_v53  ;;  %1835 = vmatpush3.bf16.msra.mxu0 %v2062_v54 }
 0x144   :  { %1168 = vmatprep.subr.bf16.mxu1 %v2060_v56  ;;  %1836 = vmatprep.subr.bf16.mxu0 %v2063_v57 }
 0x147   :  { %1169 = vmatpush2.bf16.msra.mxu1 %v2058_v58  ;;  %1837 = vmatpush3.bf16.msra.mxu0 %v2064_v59 }
 0x148   :  { %1838 = vmatprep.subr.bf16.mxu0 %v2065_v60  ;;  %1566 = vmatprep.subr.bf16.mxu1 %v2079_v3  ;;  %v366_v3 = vrot.slane %v353_v45, %v90_v28 }
 0x14a   :  { %1171 = vmatmul.mubr.bf16.vlgmr.msra.gmra.mxu1 %v2322_v55  ;;  %v2085_v55 = vld [vmem:[#allocation7 + $0x54] ss:$8 sps:$4 sm:$0xff]  }
 0x14b   :  { %1839 = vmatpush3.bf16.msra.mxu0 %v2066_v61  ;;  %1567 = vmatpush1.bf16.msra.mxu1 %v2077_v6  ;;  %v370_v6 = vrot.slane %v353_v45, %v94_v31 }
 0x14c   :  { %1840 = vmatprep.subr.bf16.mxu0 %v2067_v62  ;;  %1568 = vmatprep.subr.bf16.mxu1 %v2082_v8 }
 0x14f   :  { %1841 = vmatpush3.bf16.msra.mxu0 %v2068_v63  ;;  %1569 = vmatpush1.bf16.msra.mxu1 %v2080_v9 }
 0x150   :  { %1842 = vmatprep.subr.bf16.mxu0 %v2069_v1  ;;  %1570 = vmatprep.subr.bf16.mxu1 %v2085_v55 }
 0x153   :  { %1843 = vmatpush3.bf16.msra.mxu0 %v2070_v40  ;;  %1571 = vmatpush1.bf16.msra.mxu1 %v2083_v12 }
 0x154   :  { %1844 = vmatprep.subr.bf16.mxu0 %v2071_v2  ;;  %1572 = vmatprep.subr.bf16.mxu1 %v2088_v13 }
 0x157   :  { %1845 = vmatpush3.bf16.msra.mxu0 %v2072_v5  ;;  %1573 = vmatpush1.bf16.msra.mxu1 %v2086_v15 }
 0x158   :  { %1846 = vmatprep.subr.bf16.mxu0 %v2073_v7  ;;  %1574 = vmatprep.subr.bf16.mxu1 %v2091_v16 }
 0x15b   :  { %1847 = vmatpush3.bf16.msra.mxu0 %v2074_v10  ;;  %1575 = vmatpush1.bf16.msra.mxu1 %v2089_v17 }
 0x15c   :  { %1848 = vmatprep.subr.bf16.mxu0 %v2075_v11  ;;  %1576 = vmatprep.subr.bf16.mxu1 %v2094_v18 }
 0x15f   :  { %1849 = vmatpush3.bf16.msra.mxu0 %v2076_v14  ;;  %1577 = vmatpush1.bf16.msra.mxu1 %v2092_v19 }
 0x160   :  { %1578 = vmatprep.subr.bf16.mxu1 %v2097_v20 }
 0x163   :  { %1579 = vmatpush1.bf16.msra.mxu1 %v2095_v22  ;;  %v1394_v22 = vld [vmem:[%s2356_s8] sm:$0x3] }
 0x164   :  { %1580 = vmatprep.subr.bf16.mxu1 %v2100_v24  ;;  %v1399_v24 = vrot.slane %v1394_v22, %v2303_v21 }
 0x167   :  { %1581 = vmatpush1.bf16.msra.mxu1 %v2098_v25  ;;  %v1403_v25 = vrot.slane %v1394_v22, %v2309_v23 }
 0x168   :  { %1582 = vmatprep.subr.bf16.mxu1 %v2103_v26 }
 0x16b   :  { %1583 = vmatpush2.bf16.msra.mxu1 %v2101_v27 }
 0x16c   :  { %1584 = vmatprep.subr.bf16.mxu1 %v2106_v29 }
 0x16f   :  { %1585 = vmatpush2.bf16.msra.mxu1 %v2104_v30 }
 0x170   :  { %1586 = vmatprep.subr.bf16.mxu1 %v2109_v32  ;;  %v1785_v32 = vld [vmem:[%s2354_s6] ss:$0 sm:$0xff]  ;;  %s2230_s6 = smov [#allocation8]  }
 0x171   :  { %s1643_s8 = sshll.u32 %s2230_s6, 4  ;;  %s1644_s8 = int_to_ptr.vmem [resolvable:$true] %s1643_s8 }
 0x172   :  { %s2193_s14 = scalar_lea.vmem %s1644_s8, 256  ;;  %p2198_p2 = scmp.lt.s32.totalorder %s1644_s8, %s1644_s8 }
 0x173   :  { %1587 = vmatpush2.bf16.msra.mxu1 %v2107_v33  ;;  %p2194_p1 = scmp.ne.s32.totalorder %s1644_s8, %s2193_s14  ;;  %p2199_p3 = scmp.lt.s32.totalorder %s2193_s14, %s2193_s14 }
 0x174   :  { %1588 = vmatprep.subr.bf16.mxu1 %v2112_v34 }
 0x175   :  { %p2200_p4 = por %p2199_p3, %p2198_p2 }
 0x177   :  { %1589 = vmatpush2.bf16.msra.mxu1 %v2110_v35  ;;  %p2201_p5 = pnand %p2200_p4, %p2194_p1 }
 0x178   :  { %1590 = vmatprep.subr.bf16.mxu1 %v2115_v36  ;;  %v1611_v36 = vand.u32 127, %v80_v0 }
 0x17a   :  { %vm1612_vm2 = vcmp.lt.s32.totalorder %v1611_v36, 51 }
 0x17b   :  { %1591 = vmatpush2.bf16.msra.mxu1 %v2113_v37 }
 0x17c   :  { %1592 = vmatprep.subr.bf16.mxu1 %v2118_v38 }
 0x17f   :  { %1593 = vmatpush2.bf16.msra.mxu1 %v2116_v39 }
 0x180   :  { %1594 = vmatprep.subr.bf16.mxu1 %v2121_v41 }
 0x183   :  { %1595 = vmatpush2.bf16.msra.mxu1 %v2119_v42 }
 0x184   :  { %1596 = vmatprep.subr.bf16.mxu1 %v2124_v43 }
 0x187   :  { %1597 = vmatpush2.bf16.msra.mxu1 %v2122_v44 }
 0x1c2   :  { %v1049_v46 = vpop.f32.mrf.mxu0 }
 0x1c3   :  { %v1050_v52 = vadd.f32 %v1049_v46, %v358_v48 }
 0x1c4   :  { %v1051_v47 = vpop.f32.mrf.mxu0 }
 0x1c5   :  { %v1052_v54 = vadd.f32 %v1051_v47, %v362_v50 }
 0x1c6   :  { %v1053_v49 = vpop.f32.mrf.mxu0 }
 0x1c8   :  { %v1054_v51 = vpop.f32.mrf.mxu0 }
 0x1ca   :  { %v1090_v53 = vpop.f32.mrf.mxu1 }
 0x1cb   :  { %v1091_v56 = vadd.f32 %v1090_v53, %v1050_v52 }
 0x1cc   :  { %v1092_v57 = vpop.f32.mrf.mxu1 }
 0x1cd   :  { %v1093_v58 = vadd.f32 %v1092_v57, %v1052_v54  ;;  %v1179_v59 = vmax.f32 %v1091_v56, 0.0 }
 0x1ce   :  { %v1094_v60 = vpop.f32.mrf.mxu1 }
 0x1cf   :  { %v1180_v61 = vmax.f32 %v1093_v58, 0.0  ;;  %v1183_v1 = vpack.c.bf16 %v1179_v59, %v1179_v59 }
 0x1d0   :  { %v1095_v62 = vpop.f32.mrf.mxu1 }
 0x1d1   :  { %v1184_v63 = vpack.c.bf16 %v1180_v61, %v1180_v61 }
 0x1d3   :  { %1352 = vmatprep.mubr.bf16.mxu0 %v1184_v63 }
 0x1d4   :  { %1353 = vmatmul.mubr.bf16.vlgmr.msra.gmra.mxu0 %v1183_v1 }
 0x202   :  { %v1131_v40 = vpop.f32.mrf.mxu0 }
 0x203   :  { %v1132_v8 = vadd.f32 %v1131_v40, %v366_v3 }
 0x204   :  { %v1133_v2 = vpop.f32.mrf.mxu0 }
 0x205   :  { %v1134_v55 = vadd.f32 %v1133_v2, %v370_v6 }
 0x206   :  { %v1135_v5 = vpop.f32.mrf.mxu0 }
 0x208   :  { %v1136_v7 = vpop.f32.mrf.mxu0 }
 0x20a   :  { %v1172_v9 = vpop.f32.mrf.mxu1 }
 0x20b   :  { %v1173_v10 = vadd.f32 %v1172_v9, %v1132_v8 }
 0x20c   :  { %v1174_v11 = vpop.f32.mrf.mxu1 }
 0x20d   :  { %v1175_v12 = vadd.f32 %v1174_v11, %v1134_v55  ;;  %v1181_v13 = vmax.f32 %v1173_v10, 0.0 }
 0x20e   :  { %v1176_v14 = vpop.f32.mrf.mxu1 }
 0x20f   :  { %v1182_v15 = vmax.f32 %v1175_v12, 0.0  ;;  %v1360_v18 = vpack.c.bf16 %v1181_v13, %v1181_v13 }
 0x210   :  { %v1177_v16 = vpop.f32.mrf.mxu1 }
 0x211   :  { %v1361_v17 = vpack.c.bf16 %v1182_v15, %v1182_v15 }
 0x213   :  { %1598 = vmatprep.mubr.bf16.mxu1 %v1361_v17 }
 0x214   :  { %1599 = vmatmul.mubr.bf16.vlgmr.msra.gmra.mxu1 %v1360_v18 }
 0x294   :  { %v1850_v28 = vpop.f32.mrf.mxu0 }
 0x296   :  { %v1851_v19 = vpop.f32.mrf.mxu0 }
 0x297   :  { %v1852_v20 = vadd.f32 %v1851_v19, %v1850_v28 }
 0x298   :  { %v1853_v4 = vpop.f32.mrf.mxu0 }
 0x299   :  { %v1355_v37 = vadd.f32 %v1852_v20, %v1785_v32 }
 0x29a   :  { %v1854_v31 = vpop.f32.mrf.mxu0 }
 0x2d4   :  { %v1600_v26 = vpop.f32.mrf.mxu1 }
 0x2d5   :  { %v1601_v29 = vadd.f32 %v1600_v26, %v1399_v24 }
 0x2d6   :  { %v1602_v27 = vpop.f32.mrf.mxu1 }
 0x2d7   :  { %v1603_v30 = vadd.f32 %v1602_v27, %v1403_v25 }
 0x2d8   :  { %v1604_v33 = vpop.f32.mrf.mxu1 }
 0x2d9   :  { %v1607_v34 = vadd.f32 %v1603_v30, %v1601_v29 }
 0x2da   :  { %v1605_v35 = vpop.f32.mrf.mxu1 }
 0x2db   :  { %v1608_v38 = vmul.f32 0.5, %v1607_v34 }
 0x2dd   :  { %v1609_v39 = vsub.f32 %v1355_v37, %v1608_v38 }
 0x2df   :  { %v1613_v21 = vadd.f32 %v1609_v39, %v1601_v29  ;;  %v1624_v23 = vadd.f32 %v1609_v39, %v1603_v30 }
 0x2e1   :  { %v1614_v41 = vsel %vm1612_vm2, %v1613_v21, -1e+30  ;;  %v1625_v42 = vsel %vm1612_vm2, %v1624_v23, -1e+30 }
 0x2e2   :  { %1615 = vmax.xlane.f32.xlu0 %v1614_v41 }
 0x2e6   :  { %1626 = vmax.xlane.f32.xlu0 %v1625_v42 }
 0x36b   :  { %v1616_v43 = vpop.xlane.xlu0 %1615 }
 0x36c   :  { %v1617_v44 = vsub.f32 %v1614_v41, %v1616_v43 }
 0x36e   :  { %v1618_v45 = vmul.f32 1.442695, %v1617_v44 }
 0x36f   :  { %v1627_v46 = vpop.xlane.xlu0 %1626 }
 0x370   :  { %2125 = vpow2.f32 %v1618_v45  ;;  %v1628_v47 = vsub.f32 %v1625_v42, %v1627_v46 }
 0x372   :  { %v1629_v48 = vmul.f32 1.442695, %v1628_v47 }
 0x374   :  { %2127 = vpow2.f32 %v1629_v48 }
 0x37d   :  { %v2126_v49 = vpop.eup %2125 }
 0x37e   :  { %1620 = vadd.xlane.f32.xlu1 %v2126_v49 }
 0x381   :  { %v2128_v0 = vpop.eup %2127 }
 0x382   :  { %1631 = vadd.xlane.f32.xlu1 %v2128_v0 }
 0x407   :  { %v1621_v50 = vpop.xlane.xlu1 %1620 }
 0x408   :  { %2129 = vrcp.f32 %v1621_v50 }
 0x40b   :  { %v1632_v51 = vpop.xlane.xlu1 %1631 }
 0x40c   :  { %2131 = vrcp.f32 %v1632_v51 }
 0x415   :  { %v2130_v52 = vpop.eup %2129 }
 0x416   :  { %v1623_v53 = vmul.f32 %v2130_v52, %v2126_v49 }
 0x418   :  { %1635 = vst [vmem:[#allocation8] sm:$0xff] %v1623_v53 }
 0x419   :  { %v2132_v54 = vpop.eup %2131 }
 0x41a   :  { %v1634_v56 = vmul.f32 %v2132_v54, %v2128_v0 }
 0x41c   :  { %1636 = vst [vmem:[#allocation8 + $0x8] sm:$0xff] %v1634_v56 }
 0x41d   :  { %2204 = shalt.err (!%p2201_p5)
}
 0x41e   :  { %1646 = dma.vmem_to_hbm [thread:$0]  %s1644_s8, 256, %s2357_s9, [#allocation4]  }
 0x41f   :  { %2217 = dma.done.wait [#allocation4], 256  }
 0x420   :  { %2218 = vsyncadd [#allocation4], 4294967040 }
 0x421   :  { %1650 = vsyncpa [#allocation3], 1 }
 0x422   :  { %1651 = vsyncpa [#allocation6], 1 }
 0x423   :  { %1652 = vsyncpa [#allocation4], 1 }

</bundles_post_ra>
